<compile_context>
chip_gen: v7x
topology: tpu7x:2x2x1
jax: 0.10.0
libtpu: 0.0.40
codegen_flags: <defaults>
</compile_context>

<pallas_src>
import jax
import jax.numpy as jnp
from jax.experimental import pallas as pl
from jax.experimental.pallas import tpu as pltpu

_SUBLANE = 8
_MXU_M = 256


def _round_up(n, m):
    return ((n + m - 1) // m) * m


def policy_kernel(x_ref, w1_ref, b1_ref, w2_ref, b2_ref, out_ref):
    # fc1 + ReLU: bf16 operands on the MXU, f32 accumulation, f32 epilogue.
    x = x_ref[...].astype(jnp.bfloat16)
    h = jnp.dot(x, w1_ref[...], preferred_element_type=jnp.float32) + b1_ref[...]
    h = jnp.maximum(h, 0.0)

    # fc2 logits (narrow output_dim columns; Mosaic lane-pads internally).
    logits = jnp.dot(h.astype(jnp.bfloat16), w2_ref[...],
                     preferred_element_type=jnp.float32) + b2_ref[...]

    # Numerically-stable softmax with exact normalization (rows sum to 1).
    m = jnp.max(logits, axis=-1, keepdims=True)
    e = jnp.exp(logits - m)
    denom = jnp.sum(e, axis=-1, keepdims=True)
    out_ref[...] = (e / denom).astype(out_ref.dtype)


def policy_network_forward(state, w1, b1, w2, b2, *,
                           block_batch=2048, min_grid_batch=512):
    """state: [B, input_dim] f32 -> action probabilities [B, output_dim] f32.

    Weights are stored [in_features, out_features] (transposed vs. nn.Linear),
    so the kernel computes x @ W + b.
    """
    assert block_batch % _MXU_M == 0, "block_batch must be a multiple of 256"
    B, input_dim = state.shape
    hidden_dim = w1.shape[1]
    output_dim = w2.shape[1]

    # bf16 matmul operands (accumulation stays f32 inside the kernel).
    w1 = w1.astype(jnp.bfloat16)
    w2 = w2.astype(jnp.bfloat16)
    b1 = b1.astype(jnp.float32).reshape(1, hidden_dim)
    b2 = b2.astype(jnp.float32).reshape(1, output_dim)

    def cost(batch):
        return pl.CostEstimate(
            flops=2 * batch * (input_dim * hidden_dim + hidden_dim * output_dim),
            transcendentals=batch * output_dim,
            bytes_accessed=(batch * input_dim * 4            # state in
                            + input_dim * hidden_dim * 2     # w1 (bf16)
                            + hidden_dim * 4                 # b1
                            + hidden_dim * output_dim * 2    # w2 (bf16)
                            + output_dim * 4                 # b2
                            + batch * output_dim * 4))       # probs out

    if B <= min_grid_batch:
        # Latency path: whole problem resident in VMEM, no grid / pipeline
        # scaffolding, output stored at its native width.
        return pl.pallas_call(
            policy_kernel,
            out_shape=jax.ShapeDtypeStruct((B, output_dim), jnp.float32),
            cost_estimate=cost(B),
        )(state, w1, b1, w2, b2)

    # Throughput path: grid over the batch; weights/biases pinned at block
    # (0, 0) so they stay resident in VMEM across grid steps.  Tile chosen so
    # there are always >= 2 "parallel" tiles (v7x megacore sharding) while
    # staying <= block_batch rows per step.
    b8 = _round_up(B, _SUBLANE)
    tb = min(block_batch, _round_up(pl.cdiv(b8, 2), _MXU_M))
    num_tiles = pl.cdiv(b8, tb)
    b_pad = num_tiles * tb
    if b_pad != B:
        state = jnp.pad(state, ((0, b_pad - B), (0, 0)))

    probs = pl.pallas_call(
        policy_kernel,
        out_shape=jax.ShapeDtypeStruct((b_pad, output_dim), jnp.float32),
        grid=(num_tiles,),
        in_specs=[
            pl.BlockSpec((tb, input_dim), lambda i: (i, 0)),
            pl.BlockSpec((input_dim, hidden_dim), lambda i: (0, 0)),
            pl.BlockSpec((1, hidden_dim), lambda i: (0, 0)),
            pl.BlockSpec((hidden_dim, output_dim), lambda i: (0, 0)),
            pl.BlockSpec((1, output_dim), lambda i: (0, 0)),
        ],
        out_specs=pl.BlockSpec((tb, output_dim), lambda i: (i, 0)),
        compiler_params=pltpu.CompilerParams(
            dimension_semantics=("parallel",),
        ),
        cost_estimate=cost(b_pad),
    )(state, w1, b1, w2, b2)

    return probs[:B] if b_pad != B else probs


def init_params(key, input_dim, output_dim, hidden_dim=128):
    """Deterministic init mimicking nn.Linear: U(-1/sqrt(fan_in), 1/sqrt(fan_in))."""
    k1, k2, k3, k4 = jax.random.split(key, 4)
    lim1 = 1.0 / jnp.sqrt(jnp.float32(input_dim))
    lim2 = 1.0 / jnp.sqrt(jnp.float32(hidden_dim))
    w1 = jax.random.uniform(k1, (input_dim, hidden_dim), jnp.float32, -lim1, lim1)
    b1 = jax.random.uniform(k2, (hidden_dim,), jnp.float32, -lim1, lim1)
    w2 = jax.random.uniform(k3, (hidden_dim, output_dim), jnp.float32, -lim2, lim2)
    b2 = jax.random.uniform(k4, (output_dim,), jnp.float32, -lim2, lim2)
    return w1, b1, w2, b2


if __name__ == "__main__":
    key = jax.random.PRNGKey(0)
    k_state, k_params, k_big = jax.random.split(key, 3)

    input_dim, hidden_dim, output_dim = 16, 128, 8
    w1, b1, w2, b2 = init_params(k_params, input_dim, output_dim, hidden_dim)

    def reference(s):
        # Same bf16-operand / f32-accumulate recipe as the kernel.
        h = jnp.dot(s.astype(jnp.bfloat16), w1.astype(jnp.bfloat16),
                    preferred_element_type=jnp.float32) + b1
        h = jnp.maximum(h, 0.0)
        logits = jnp.dot(h.astype(jnp.bfloat16), w2.astype(jnp.bfloat16),
                         preferred_element_type=jnp.float32) + b2
        return jax.nn.softmax(logits, axis=-1)

    # --- small batch: gridless latency path ---------------------------------
    batch = 2
    state = jax.random.normal(k_state, (batch, input_dim), jnp.float32)
    probs = jax.block_until_ready(policy_network_forward(state, w1, b1, w2, b2))
    assert probs.shape == (batch, output_dim)
    assert jnp.allclose(probs, reference(state), atol=2e-3), "small-batch mismatch"
    assert jnp.allclose(jnp.sum(probs, axis=-1), 1.0, atol=1e-4), "rows must sum to 1"

    # --- larger batch: batch-tiled "parallel" path (grid over batch) --------
    big_batch = 2048
    big_state = jax.random.normal(k_big, (big_batch, input_dim), jnp.float32)
    big_probs = jax.block_until_ready(
        policy_network_forward(big_state, w1, b1, w2, b2))
    assert big_probs.shape == (big_batch, output_dim)
    assert jnp.allclose(big_probs, reference(big_state), atol=2e-3), "tiled mismatch"
    assert jnp.allclose(jnp.sum(big_probs, axis=-1), 1.0, atol=1e-4)

    print("KERNEL_OK")
</pallas_src>

<mosaic_0001>
module attributes {stable_mosaic.version = 11 : i64} {
  func.func @policy_kernel(%arg0: memref<2x16xf32, #tpu.memory_space<vmem>>, %arg1: memref<16x128xbf16, #tpu.memory_space<vmem>>, %arg2: memref<1x128xf32, #tpu.memory_space<vmem>>, %arg3: memref<128x8xbf16, #tpu.memory_space<vmem>>, %arg4: memref<1x8xf32, #tpu.memory_space<vmem>>, %arg5: memref<2x8xf32, #tpu.memory_space<vmem>>) attributes {dimension_semantics = [], scalar_prefetch = 0 : i64, scratch_operands = 0 : i64, tpu.core_type = #tpu.core_type<tc>} {
    %c0 = arith.constant 0 : index
    %c0_0 = arith.constant 0 : index
    %0 = vector.load %arg0[%c0, %c0_0] : memref<2x16xf32, #tpu.memory_space<vmem>>, vector<2x16xf32>
    %1 = arith.truncf %0 : vector<2x16xf32> to vector<2x16xbf16>
    %c0_1 = arith.constant 0 : index
    %c0_2 = arith.constant 0 : index
    %2 = vector.load %arg1[%c0_1, %c0_2] : memref<16x128xbf16, #tpu.memory_space<vmem>>, vector<16x128xbf16>
    %cst = arith.constant dense<0.000000e+00> : vector<2x128xf32>
    %3 = tpu.matmul %1, %2, %cst {dimension_numbers = #tpu.dot_dimension_numbers<[1], [0], [0], [1], [0, 0, 1, 1], [], []>} : vector<2x16xbf16>, vector<16x128xbf16>, vector<2x128xf32> -> vector<2x128xf32>
    %c0_3 = arith.constant 0 : index
    %c0_4 = arith.constant 0 : index
    %4 = vector.load %arg2[%c0_3, %c0_4] : memref<1x128xf32, #tpu.memory_space<vmem>>, vector<1x128xf32>
    %5 = vector.broadcast %4 : vector<1x128xf32> to vector<2x128xf32>
    %6 = arith.addf %3, %5 : vector<2x128xf32>
    %cst_5 = arith.constant 0.000000e+00 : f32
    %7 = vector.broadcast %cst_5 : f32 to vector<2x128xf32>
    %8 = arith.maximumf %6, %7 : vector<2x128xf32>
    %9 = arith.truncf %8 : vector<2x128xf32> to vector<2x128xbf16>
    %c0_6 = arith.constant 0 : index
    %c0_7 = arith.constant 0 : index
    %10 = vector.load %arg3[%c0_6, %c0_7] : memref<128x8xbf16, #tpu.memory_space<vmem>>, vector<128x8xbf16>
    %cst_8 = arith.constant dense<0.000000e+00> : vector<2x8xf32>
    %11 = tpu.matmul %9, %10, %cst_8 {dimension_numbers = #tpu.dot_dimension_numbers<[1], [0], [0], [1], [0, 0, 1, 1], [], []>} : vector<2x128xbf16>, vector<128x8xbf16>, vector<2x8xf32> -> vector<2x8xf32>
    %c0_9 = arith.constant 0 : index
    %c0_10 = arith.constant 0 : index
    %12 = vector.load %arg4[%c0_9, %c0_10] : memref<1x8xf32, #tpu.memory_space<vmem>>, vector<1x8xf32>
    %13 = vector.broadcast %12 : vector<1x8xf32> to vector<2x8xf32>
    %14 = arith.addf %11, %13 : vector<2x8xf32>
    %cst_11 = arith.constant dense<0xFF800000> : vector<2xf32>
    %15 = vector.multi_reduction <maximumf>, %14, %cst_11 [1] : vector<2x8xf32> to vector<2xf32>
    %16 = vector.shape_cast %15 : vector<2xf32> to vector<2x1xf32>
    %17 = vector.broadcast %16 : vector<2x1xf32> to vector<2x8xf32>
    %18 = arith.subf %14, %17 : vector<2x8xf32>
    %19 = math.exp %18 : vector<2x8xf32>
    %cst_12 = arith.constant dense<0.000000e+00> : vector<2xf32>
    %20 = vector.multi_reduction <add>, %19, %cst_12 [1] : vector<2x8xf32> to vector<2xf32>
    %21 = vector.shape_cast %20 : vector<2xf32> to vector<2x1xf32>
    %22 = vector.broadcast %21 : vector<2x1xf32> to vector<2x8xf32>
    %23 = arith.divf %19, %22 : vector<2x8xf32>
    %c0_13 = arith.constant 0 : index
    %c0_14 = arith.constant 0 : index
    %24 = vector.load %arg5[%c0_13, %c0_14] : memref<2x8xf32, #tpu.memory_space<vmem>>, vector<2x8xf32>
    tpu.vector_store %arg5[%c0_13, %c0_14], %23 {strides = array<i32>} : memref<2x8xf32, #tpu.memory_space<vmem>>, vector<2x8xf32>,
    return
  }
}

</mosaic_0001>

<bundles_post_ra>
// kernel: tpu_custom_call.1
= control target key start
LH: loop header
LB: loop body
LE: loop exit
PB: predicated region body
PF: predicated region fallthrough
CT: control target
= control target key end

     0   :  { %v312_v1 = vmov 0.0   ;;  %vm313_vm0 = vmmov 0   ;;  %vm39_vm1 = vcmask 130048   ;;  %s396_s0 = inlined_call_operand.vmem [shape: f32[2,16], index: 0, kind: input, shape index: {}]   ;;  %s397_s1 = inlined_call_operand.vmem [shape: bf16[16,128], index: 1, kind: input, shape index: {}]   ;;  %s398_s2 = inlined_call_operand.vmem [shape: f32[1,128], index: 2, kind: input, shape index: {}]   ;;  %s399_s3 = inlined_call_operand.vmem [shape: bf16[128,8], index: 3, kind: input, shape index: {}]   ;;  %s400_s4 = inlined_call_operand.vmem [shape: f32[1,8], index: 4, kind: input, shape index: {}]   ;;  %s401_s5 = inlined_call_operand.hbm [shape: f32[2,8], index: 5, kind: output, shape index: {}]  }
   0x1   :  { %v275_v0 = vld [vmem:[%s397_s1] sm:$0xff]   ;;  %246 = vmatprep.subr.bf16.mxu0 %v312_v1  ;;  %252 = vmatprep.subr.bf16.mxu1 %v312_v1  ;;  %v277_v5 = vld [vmem:[%s399_s3 + $0x8] sm:$0xff]   ;;  %v278_v6 = vld [vmem:[%s399_s3 + $0x10] sm:$0xff]  }
   0x2   :  { %v22_v2 = vld [vmem:[%s396_s0] sm:$0x3]  ;;  %247 = vmatpush3.bf16.msra.mxu0 %v275_v0  ;;  %248 = vmatprep.mubr.msk.bf16.mxu0 %vm313_vm0, %v312_v1 }
   0x3   :  { %v23_v3 = vpack.c.bf16 %v22_v2, %v22_v2  ;;  %v276_v4 = vld [vmem:[%s399_s3] sm:$0xff]   ;;  %268 = vmatprep.mubr.msk.bf16.mxu1 %vm313_vm0, %v312_v1 }
   0x4   :  { %253 = vmatpush3.bf16.msra.mxu1 %v276_v4 }
   0x5   :  { %249 = vmatmul.mubr.msk.bf16.vlgmr.msra.gmra.mrb[0].mxu0 %vm39_vm1, %v23_v3  ;;  %254 = vmatprep.subr.bf16.mxu1 %v312_v1 }
   0x8   :  { %255 = vmatpush3.bf16.msra.mxu1 %v277_v5 }
   0x9   :  { %256 = vmatprep.subr.bf16.mxu1 %v312_v1 }
   0xa   :  { %10 = vsyncpa [#allocation3], 0  ;;  %v279_v7 = vld [vmem:[%s399_s3 + $0x18] sm:$0xff]   ;;  %v280_v8 = vld [vmem:[%s399_s3 + $0x20] sm:$0xff]   ;;  %vm196_vm2 = vcmask 58368  }
   0xb   :  { %v281_v9 = vld [vmem:[%s399_s3 + $0x28] sm:$0xff]   ;;  %v282_v10 = vld [vmem:[%s399_s3 + $0x30] sm:$0xff]   ;;  %v283_v11 = vld [vmem:[%s399_s3 + $0x38] sm:$0xff]  }
   0xc   :  { %257 = vmatpush3.bf16.msra.mxu1 %v278_v6  ;;  %v223_v12 = vld [vmem:[%s398_s2] ss:$0 sm:$0xff]  ;;  %s314_s2 = smov [#allocation2]  }
   0xd   :  { %258 = vmatprep.subr.bf16.mxu1 %v312_v1  ;;  %v226_v20 = vld [vmem:[%s400_s4] ss:$0 sm:$0xff]  ;;  %s215_s3 = sshll.u32 %s314_s2, 4  ;;  %s216_s3 = int_to_ptr.vmem [resolvable:$true] %s215_s3 }
   0xe   :  { %s288_s4 = scalar_lea.vmem %s216_s3, 32  ;;  %p293_p1 = scmp.lt.s32.totalorder %s216_s3, %s216_s3 }
   0xf   :  { %p289_p0 = scmp.ne.s32.totalorder %s216_s3, %s288_s4  ;;  %p294_p2 = scmp.lt.s32.totalorder %s288_s4, %s288_s4 }
  0x10   :  { %259 = vmatpush3.bf16.msra.mxu1 %v279_v7 }
  0x11   :  { %260 = vmatprep.subr.bf16.mxu1 %v312_v1  ;;  %p295_p3 = por %p294_p2, %p293_p1 }
  0x13   :  { %p296_p4 = pnand %p295_p3, %p289_p0 }
  0x14   :  { %261 = vmatpush3.bf16.msra.mxu1 %v280_v8 }
  0x15   :  { %262 = vmatprep.subr.bf16.mxu1 %v312_v1 }
  0x18   :  { %263 = vmatpush3.bf16.msra.mxu1 %v281_v9 }
  0x19   :  { %264 = vmatprep.subr.bf16.mxu1 %v312_v1 }
  0x1c   :  { %265 = vmatpush3.bf16.msra.mxu1 %v282_v10 }
  0x1d   :  { %266 = vmatprep.subr.bf16.mxu1 %v312_v1 }
  0x20   :  { %267 = vmatpush3.bf16.msra.mxu1 %v283_v11 }
  0xd8   :  { %v77_v13 = vpop.f32.mrb[0].mxu0 }
  0xd9   :  { %v78_v14 = vadd.f32 %v223_v12, %v77_v13  ;;  %v250_v15 = vpop.f32.mrb[1].mxu0 }
  0xda   :  { %v80_v16 = vpop.f32.mrb[2].mxu0 }
  0xdb   :  { %v83_v17 = vmax.f32 %v78_v14, 0.0  ;;  %v251_v18 = vpop.f32.mrb[3].mxu0 }
  0xdd   :  { %v84_v19 = vpack.c.bf16 %v83_v17, %v83_v17 }
  0xdf   :  { %269 = vmatmul.mubr.bf16.vlgmr.msra.gmra.mrb[0].mxu1 %v84_v19 }
 0x1b2   :  { %v190_v21 = vpop.f32.mrb[0].mxu1 }
 0x1b3   :  { %v191_v22 = vadd.f32 %v226_v20, %v190_v21  ;;  %v270_v23 = vpop.f32.mrb[1].mxu1 }
 0x1b4   :  { %v193_v24 = vpop.f32.mrb[2].mxu1 }
 0x1b5   :  { %v271_v25 = vpop.f32.mrb[3].mxu1  ;;  %v197_v26 = vsel %vm196_vm2, %v191_v22, -inf }
 0x1b6   :  { %198 = vmax.xlane.f32.xlu0 %v197_v26 }
 0x243   :  { %v199_v27 = vpop.xlane.xlu0 %198 }
 0x244   :  { %v200_v28 = vsub.f32 %v191_v22, %v199_v27 }
 0x246   :  { %v201_v29 = vmul.f32 1.442695, %v200_v28 }
 0x248   :  { %284 = vpow2.f32 %v201_v29 }
 0x252   :  { %v285_v30 = vpop.eup %284 }
 0x253   :  { %v203_v31 = vsel %vm196_vm2, %v285_v30, 0.0 }
 0x254   :  { %204 = vadd.xlane.f32.xlu0 %v203_v31 }
 0x2e1   :  { %v205_v32 = vpop.xlane.xlu0 %204 }
 0x2e2   :  { %286 = vrcp.f32 %v205_v32 }
 0x2ec   :  { %v287_v33 = vpop.eup %286 }
 0x2ed   :  { %v207_v34 = vmul.f32 %v287_v33, %v285_v30 }
 0x2ef   :  { %208 = vst.msk [vmem:[#allocation2] sm:$0x3] %vm196_vm2, %v207_v34 }
 0x2f0   :  { %299 = shalt.err (!%p296_p4)
}
 0x2f1   :  { %s300_s17 = scalar_lea.hbm %s401_s5, 32 }
 0x2f2   :  { %p301_p5 = scmp.ne.s32.totalorder %s401_s5, %s300_s17  ;;  %p304_p6 = scmp.lt.u32.totalorder %s300_s17, %s401_s5 }
 0x2f4   :  { %p306_p7 = pnand %p304_p6, %p301_p5 }
 0x2f6   :  { %309 = shalt.err (!%p306_p7)
}
 0x2f7   :  { %218 = dma.vmem_to_hbm [thread:$0]  %s216_s3, 32, %s401_s5, [#allocation3]  }
 0x2f8   :  { %310 = dma.done.wait [#allocation3], 32  }
 0x2f9   :  { %311 = vsyncadd [#allocation3], 4294967264 }
 0x2fa   :  { %222 = vsyncpa [#allocation3], 1 }

</bundles_post_ra>
